<compile_context>
chip_gen: v7x
topology: tpu7x:2x2x1
jax: 0.10.0
libtpu: 0.0.40
codegen_flags: <defaults>
</compile_context>

<pallas_src>
import jax
import jax.numpy as jnp
from jax.experimental import pallas as pl
from jax.experimental.pallas import tpu as pltpu

LANES = 128          # lane-dense padded feature width
HIDDEN = 10          # true hidden width
IN_F = 4             # true input width
OUT_F = 3            # true output width
PARAM_ROWS = 16      # 4 (W1) + 1 (b1) + 10 (W2) + 1 (b2), padded to sublane 8x2


def irisnet_kernel(x_ref, p_ref, o_ref):
    """Fused MLP tile: out = relu(x @ W1 + b1) @ W2 + b2 (all VPU FMAs)."""
    x = x_ref[...]                       # (TM, 4)
    p = p_ref[...]                       # (16, 128) packed params
    tm = x.shape[0]

    # ---- layer 1: h = relu(x @ W1 + b1), hidden padded to 128 lanes ----
    # rows 0..3 of p are W1 (lane-padded), row 4 is b1.
    h = jnp.broadcast_to(p[4:5, :], (tm, LANES))          # init with bias
    for k in range(IN_F):                                  # K=4 unrolled FMAs
        h = h + x[:, k:k + 1] * p[k:k + 1, :]
    h = jnp.maximum(h, 0.0)                                # ReLU on VPU
    # padded hidden lanes (10..127) are exactly 0 (zero weights, zero bias).

    # ---- layer 2: y = h @ W2 + b2, output padded to 128 lanes ----
    # rows 5..14 of p are W2 (lane-padded), row 15 is b2.
    y = jnp.broadcast_to(p[15:16, :], (tm, LANES))         # init with bias
    for k in range(HIDDEN):                                # K=10 unrolled FMAs
        y = y + h[:, k:k + 1] * p[5 + k:6 + k, :]

    o_ref[...] = y.astype(o_ref.dtype)


def pack_params(w1, b1, w2, b2):
    """Pack W1/b1/W2/b2 into one (16,128) (8,128)-aligned f32 slab."""
    p = jnp.zeros((PARAM_ROWS, LANES), jnp.float32)
    p = p.at[0:IN_F, 0:HIDDEN].set(w1.astype(jnp.float32))       # rows 0..3
    p = p.at[IN_F, 0:HIDDEN].set(b1.reshape(HIDDEN).astype(jnp.float32))  # row 4
    p = p.at[IN_F + 1:IN_F + 1 + HIDDEN, 0:OUT_F].set(w2.astype(jnp.float32))  # rows 5..14
    p = p.at[PARAM_ROWS - 1, 0:OUT_F].set(b2.reshape(OUT_F).astype(jnp.float32))  # row 15
    return p


def irisnet_forward(x, w1, b1, w2, b2, *, tm=512):
    """x: (B, 4) f32 -> (B, 3) f32. Matches torch: fc2(relu(fc1(x)))."""
    B, fin = x.shape
    assert fin == IN_F
    params = pack_params(w1, b1, w2, b2)

    # Tile the batch axis. Tile rows must be a multiple of 8 (sublane).
    b_aligned = ((B + 7) // 8) * 8
    tile = min(tm, b_aligned)
    b_pad = ((B + tile - 1) // tile) * tile
    if b_pad != B:
        x = jnp.pad(x, ((0, b_pad - B), (0, 0)))
    grid = (b_pad // tile,)

    out = pl.pallas_call(
        irisnet_kernel,
        out_shape=jax.ShapeDtypeStruct((b_pad, LANES), jnp.float32),
        grid_spec=pl.GridSpec(
            grid=grid,
            in_specs=[
                # batch tile of x; last dim 4 == full array dim (allowed).
                pl.BlockSpec((tile, IN_F), lambda i: (i, 0)),
                # packed params: constant index_map -> resident across grid.
                pl.BlockSpec((PARAM_ROWS, LANES), lambda i: (0, 0)),
            ],
            # lane-dense (tile, 128) output block -> unmasked full-width stores.
            out_specs=pl.BlockSpec((tile, LANES), lambda i: (i, 0)),
        ),
        compiler_params=pltpu.CompilerParams(
            dimension_semantics=("parallel",),   # shard batch across TCs on v7x
        ),
    )(x, params)

    return out[:B, :OUT_F]


def init_params(key):
    # Deterministic synthetic init mimicking PyTorch nn.Linear default
    # (uniform in [-1/sqrt(fan_in), 1/sqrt(fan_in)]).
    k1, k2, k3, k4 = jax.random.split(key, 4)
    bound1 = 1.0 / jnp.sqrt(4.0)
    bound2 = 1.0 / jnp.sqrt(10.0)
    w1 = jax.random.uniform(k1, (IN_F, HIDDEN), jnp.float32, -bound1, bound1)
    b1 = jax.random.uniform(k2, (HIDDEN,), jnp.float32, -bound1, bound1)
    w2 = jax.random.uniform(k3, (HIDDEN, OUT_F), jnp.float32, -bound2, bound2)
    b2 = jax.random.uniform(k4, (OUT_F,), jnp.float32, -bound2, bound2)
    return w1, b1, w2, b2


if __name__ == "__main__":
    key = jax.random.PRNGKey(0)
    kx, kp = jax.random.split(key)
    batch = 8
    x = jax.random.normal(kx, (batch, IN_F), jnp.float32)
    w1, b1, w2, b2 = init_params(kp)

    out = irisnet_forward(x, w1, b1, w2, b2)
    out = jax.block_until_ready(out)

    # Cross-check against pure-JAX reference (same math as the torch module).
    ref = jnp.maximum(x @ w1 + b1, 0.0) @ w2 + b2
    assert out.shape == (batch, OUT_F)
    assert jnp.allclose(out, ref, atol=1e-5, rtol=1e-5)

    print("KERNEL_OK")
</pallas_src>

<mosaic_0001>
module attributes {stable_mosaic.version = 11 : i64} {
  func.func @irisnet_kernel(%arg0: i32, %arg1: memref<8x4xf32, #tpu.memory_space<vmem>>, %arg2: memref<16x128xf32, #tpu.memory_space<vmem>>, %arg3: memref<8x128xf32, #tpu.memory_space<vmem>>) attributes {dimension_semantics = [#tpu.dimension_semantics<parallel>], iteration_bounds = array<i64: 1>, scalar_prefetch = 0 : i64, scratch_operands = 0 : i64, tpu.core_type = #tpu.core_type<tc>, window_params = [{transform_indices = @transform_0, window_bounds = array<i64: 8, 4>}, {pipeline_mode = #tpu.pipeline_mode<synchronous>, transform_indices = @transform_1, window_bounds = array<i64: 16, 128>}, {transform_indices = @transform_2, window_bounds = array<i64: 8, 128>}]} {
    %c0 = arith.constant 0 : index
    %c0_0 = arith.constant 0 : index
    %0 = vector.load %arg1[%c0, %c0_0] : memref<8x4xf32, #tpu.memory_space<vmem>>, vector<8x4xf32>
    %c0_1 = arith.constant 0 : index
    %c0_2 = arith.constant 0 : index
    %1 = vector.load %arg2[%c0_1, %c0_2] : memref<16x128xf32, #tpu.memory_space<vmem>>, vector<16x128xf32>
    %2 = vector.extract_strided_slice %1 {offsets = [4, 0], sizes = [1, 128], strides = [1, 1]} : vector<16x128xf32> to vector<1x128xf32>
    %3 = vector.shape_cast %2 : vector<1x128xf32> to vector<1x128xf32>
    %4 = vector.broadcast %3 : vector<1x128xf32> to vector<8x128xf32>
    %5 = vector.extract_strided_slice %0 {offsets = [0, 0], sizes = [8, 1], strides = [1, 1]} : vector<8x4xf32> to vector<8x1xf32>
    %6 = vector.extract_strided_slice %1 {offsets = [0, 0], sizes = [1, 128], strides = [1, 1]} : vector<16x128xf32> to vector<1x128xf32>
    %7 = vector.broadcast %5 : vector<8x1xf32> to vector<8x128xf32>
    %8 = vector.broadcast %6 : vector<1x128xf32> to vector<8x128xf32>
    %9 = arith.mulf %7, %8 : vector<8x128xf32>
    %10 = arith.addf %4, %9 : vector<8x128xf32>
    %11 = vector.extract_strided_slice %0 {offsets = [0, 1], sizes = [8, 1], strides = [1, 1]} : vector<8x4xf32> to vector<8x1xf32>
    %12 = vector.extract_strided_slice %1 {offsets = [1, 0], sizes = [1, 128], strides = [1, 1]} : vector<16x128xf32> to vector<1x128xf32>
    %13 = vector.broadcast %11 : vector<8x1xf32> to vector<8x128xf32>
    %14 = vector.broadcast %12 : vector<1x128xf32> to vector<8x128xf32>
    %15 = arith.mulf %13, %14 : vector<8x128xf32>
    %16 = arith.addf %10, %15 : vector<8x128xf32>
    %17 = vector.extract_strided_slice %0 {offsets = [0, 2], sizes = [8, 1], strides = [1, 1]} : vector<8x4xf32> to vector<8x1xf32>
    %18 = vector.extract_strided_slice %1 {offsets = [2, 0], sizes = [1, 128], strides = [1, 1]} : vector<16x128xf32> to vector<1x128xf32>
    %19 = vector.broadcast %17 : vector<8x1xf32> to vector<8x128xf32>
    %20 = vector.broadcast %18 : vector<1x128xf32> to vector<8x128xf32>
    %21 = arith.mulf %19, %20 : vector<8x128xf32>
    %22 = arith.addf %16, %21 : vector<8x128xf32>
    %23 = vector.extract_strided_slice %0 {offsets = [0, 3], sizes = [8, 1], strides = [1, 1]} : vector<8x4xf32> to vector<8x1xf32>
    %24 = vector.extract_strided_slice %1 {offsets = [3, 0], sizes = [1, 128], strides = [1, 1]} : vector<16x128xf32> to vector<1x128xf32>
    %25 = vector.broadcast %23 : vector<8x1xf32> to vector<8x128xf32>
    %26 = vector.broadcast %24 : vector<1x128xf32> to vector<8x128xf32>
    %27 = arith.mulf %25, %26 : vector<8x128xf32>
    %28 = arith.addf %22, %27 : vector<8x128xf32>
    %cst = arith.constant 0.000000e+00 : f32
    %29 = vector.broadcast %cst : f32 to vector<8x128xf32>
    %30 = arith.maximumf %28, %29 : vector<8x128xf32>
    %31 = vector.extract_strided_slice %1 {offsets = [15, 0], sizes = [1, 128], strides = [1, 1]} : vector<16x128xf32> to vector<1x128xf32>
    %32 = vector.shape_cast %31 : vector<1x128xf32> to vector<1x128xf32>
    %33 = vector.broadcast %32 : vector<1x128xf32> to vector<8x128xf32>
    %34 = vector.extract_strided_slice %30 {offsets = [0, 0], sizes = [8, 1], strides = [1, 1]} : vector<8x128xf32> to vector<8x1xf32>
    %35 = vector.extract_strided_slice %1 {offsets = [5, 0], sizes = [1, 128], strides = [1, 1]} : vector<16x128xf32> to vector<1x128xf32>
    %36 = vector.broadcast %34 : vector<8x1xf32> to vector<8x128xf32>
    %37 = vector.broadcast %35 : vector<1x128xf32> to vector<8x128xf32>
    %38 = arith.mulf %36, %37 : vector<8x128xf32>
    %39 = arith.addf %33, %38 : vector<8x128xf32>
    %40 = vector.extract_strided_slice %30 {offsets = [0, 1], sizes = [8, 1], strides = [1, 1]} : vector<8x128xf32> to vector<8x1xf32>
    %41 = vector.extract_strided_slice %1 {offsets = [6, 0], sizes = [1, 128], strides = [1, 1]} : vector<16x128xf32> to vector<1x128xf32>
    %42 = vector.broadcast %40 : vector<8x1xf32> to vector<8x128xf32>
    %43 = vector.broadcast %41 : vector<1x128xf32> to vector<8x128xf32>
    %44 = arith.mulf %42, %43 : vector<8x128xf32>
    %45 = arith.addf %39, %44 : vector<8x128xf32>
    %46 = vector.extract_strided_slice %30 {offsets = [0, 2], sizes = [8, 1], strides = [1, 1]} : vector<8x128xf32> to vector<8x1xf32>
    %47 = vector.extract_strided_slice %1 {offsets = [7, 0], sizes = [1, 128], strides = [1, 1]} : vector<16x128xf32> to vector<1x128xf32>
    %48 = vector.broadcast %46 : vector<8x1xf32> to vector<8x128xf32>
    %49 = vector.broadcast %47 : vector<1x128xf32> to vector<8x128xf32>
    %50 = arith.mulf %48, %49 : vector<8x128xf32>
    %51 = arith.addf %45, %50 : vector<8x128xf32>
    %52 = vector.extract_strided_slice %30 {offsets = [0, 3], sizes = [8, 1], strides = [1, 1]} : vector<8x128xf32> to vector<8x1xf32>
    %53 = vector.extract_strided_slice %1 {offsets = [8, 0], sizes = [1, 128], strides = [1, 1]} : vector<16x128xf32> to vector<1x128xf32>
    %54 = vector.broadcast %52 : vector<8x1xf32> to vector<8x128xf32>
    %55 = vector.broadcast %53 : vector<1x128xf32> to vector<8x128xf32>
    %56 = arith.mulf %54, %55 : vector<8x128xf32>
    %57 = arith.addf %51, %56 : vector<8x128xf32>
    %58 = vector.extract_strided_slice %30 {offsets = [0, 4], sizes = [8, 1], strides = [1, 1]} : vector<8x128xf32> to vector<8x1xf32>
    %59 = vector.extract_strided_slice %1 {offsets = [9, 0], sizes = [1, 128], strides = [1, 1]} : vector<16x128xf32> to vector<1x128xf32>
    %60 = vector.broadcast %58 : vector<8x1xf32> to vector<8x128xf32>
    %61 = vector.broadcast %59 : vector<1x128xf32> to vector<8x128xf32>
    %62 = arith.mulf %60, %61 : vector<8x128xf32>
    %63 = arith.addf %57, %62 : vector<8x128xf32>
    %64 = vector.extract_strided_slice %30 {offsets = [0, 5], sizes = [8, 1], strides = [1, 1]} : vector<8x128xf32> to vector<8x1xf32>
    %65 = vector.extract_strided_slice %1 {offsets = [10, 0], sizes = [1, 128], strides = [1, 1]} : vector<16x128xf32> to vector<1x128xf32>
    %66 = vector.broadcast %64 : vector<8x1xf32> to vector<8x128xf32>
    %67 = vector.broadcast %65 : vector<1x128xf32> to vector<8x128xf32>
    %68 = arith.mulf %66, %67 : vector<8x128xf32>
    %69 = arith.addf %63, %68 : vector<8x128xf32>
    %70 = vector.extract_strided_slice %30 {offsets = [0, 6], sizes = [8, 1], strides = [1, 1]} : vector<8x128xf32> to vector<8x1xf32>
    %71 = vector.extract_strided_slice %1 {offsets = [11, 0], sizes = [1, 128], strides = [1, 1]} : vector<16x128xf32> to vector<1x128xf32>
    %72 = vector.broadcast %70 : vector<8x1xf32> to vector<8x128xf32>
    %73 = vector.broadcast %71 : vector<1x128xf32> to vector<8x128xf32>
    %74 = arith.mulf %72, %73 : vector<8x128xf32>
    %75 = arith.addf %69, %74 : vector<8x128xf32>
    %76 = vector.extract_strided_slice %30 {offsets = [0, 7], sizes = [8, 1], strides = [1, 1]} : vector<8x128xf32> to vector<8x1xf32>
    %77 = vector.extract_strided_slice %1 {offsets = [12, 0], sizes = [1, 128], strides = [1, 1]} : vector<16x128xf32> to vector<1x128xf32>
    %78 = vector.broadcast %76 : vector<8x1xf32> to vector<8x128xf32>
    %79 = vector.broadcast %77 : vector<1x128xf32> to vector<8x128xf32>
    %80 = arith.mulf %78, %79 : vector<8x128xf32>
    %81 = arith.addf %75, %80 : vector<8x128xf32>
    %82 = vector.extract_strided_slice %30 {offsets = [0, 8], sizes = [8, 1], strides = [1, 1]} : vector<8x128xf32> to vector<8x1xf32>
    %83 = vector.extract_strided_slice %1 {offsets = [13, 0], sizes = [1, 128], strides = [1, 1]} : vector<16x128xf32> to vector<1x128xf32>
    %84 = vector.broadcast %82 : vector<8x1xf32> to vector<8x128xf32>
    %85 = vector.broadcast %83 : vector<1x128xf32> to vector<8x128xf32>
    %86 = arith.mulf %84, %85 : vector<8x128xf32>
    %87 = arith.addf %81, %86 : vector<8x128xf32>
    %88 = vector.extract_strided_slice %30 {offsets = [0, 9], sizes = [8, 1], strides = [1, 1]} : vector<8x128xf32> to vector<8x1xf32>
    %89 = vector.extract_strided_slice %1 {offsets = [14, 0], sizes = [1, 128], strides = [1, 1]} : vector<16x128xf32> to vector<1x128xf32>
    %90 = vector.broadcast %88 : vector<8x1xf32> to vector<8x128xf32>
    %91 = vector.broadcast %89 : vector<1x128xf32> to vector<8x128xf32>
    %92 = arith.mulf %90, %91 : vector<8x128xf32>
    %93 = arith.addf %87, %92 : vector<8x128xf32>
    %c0_3 = arith.constant 0 : index
    %c0_4 = arith.constant 0 : index
    %94 = vector.load %arg3[%c0_3, %c0_4] : memref<8x128xf32, #tpu.memory_space<vmem>>, vector<8x128xf32>
    tpu.vector_store %arg3[%c0_3, %c0_4], %93 {strides = array<i32>} : memref<8x128xf32, #tpu.memory_space<vmem>>, vector<8x128xf32>,
    return
  }
  func.func @transform_0(%arg0: i32) -> (i32, i32) {
    %c0_i32 = arith.constant 0 : i32
    %c0_i32_0 = arith.constant 0 : i32
    return %arg0, %c0_i32 : i32, i32
  }
  func.func @transform_1(%arg0: i32) -> (i32, i32) {
    %c0_i32 = arith.constant 0 : i32
    %c0_i32_0 = arith.constant 0 : i32
    %c0_i32_1 = arith.constant 0 : i32
    return %c0_i32, %c0_i32_0 : i32, i32
  }
  func.func @transform_2(%arg0: i32) -> (i32, i32) {
    %c0_i32 = arith.constant 0 : i32
    %c0_i32_0 = arith.constant 0 : i32
    return %arg0, %c0_i32 : i32, i32
  }
}

</mosaic_0001>

<bundles_post_ra>
// kernel: tpu_custom_call.1
= control target key start
LH: loop header
LB: loop body
LE: loop exit
PB: predicated region body
PF: predicated region fallthrough
CT: control target
= control target key end

     0   :  { %7 = vsyncpa [#allocation3], 0  ;;  %s357_s0 = inlined_call_operand.vmem [shape: f32[8,4], index: 0, kind: input, shape index: {}]   ;;  %s358_s1 = inlined_call_operand.hbm [shape: f32[16,128], index: 1, kind: input, shape index: {}]   ;;  %s359_s2 = inlined_call_operand.hbm [shape: f32[8,128], index: 2, kind: output, shape index: {}]  }
   0x1   :  { %8 = vsyncpa [#allocation4], 0  ;;  %s271_s9 = smov [#allocation2]   ;;  %s223_s13 = scalar_lea.hbm %s358_s1, 256 }
   0x2   :  { %s16_s10 = sshll.u32 %s271_s9, 4  ;;  %p224_p0 = scmp.ne.s32.totalorder %s358_s1, %s223_s13  ;;  %s17_s10 = int_to_ptr.vmem [resolvable:$true] %s16_s10 }
   0x3   :  { %p227_p1 = scmp.lt.u32.totalorder %s223_s13, %s358_s1 }
   0x5   :  { %p229_p2 = pnand %p227_p1, %p224_p0 }
   0x7   :  { %232 = shalt.err (!%p229_p2)
}
   0x8   :  { %s233_s18 = scalar_lea.vmem %s17_s10, 256  ;;  %p238_p4 = scmp.lt.s32.totalorder %s17_s10, %s17_s10 }
   0x9   :  { %p234_p3 = scmp.ne.s32.totalorder %s17_s10, %s233_s18  ;;  %p239_p5 = scmp.lt.s32.totalorder %s233_s18, %s233_s18 }
   0xb   :  { %p240_p6 = por %p239_p5, %p238_p4 }
   0xd   :  { %p241_p7 = pnand %p240_p6, %p234_p3 }
   0xf   :  { %244 = shalt.err (!%p241_p7)
}
  0x10   :  { %s272_s19 = smov 128   ;;  %s273_s20 = smov 8  }
  0x11   :  { %22 = dma.hbm_to_vmem [thread:$0]  %s358_s1, 256, %s17_s10, [#allocation3], %s272_s19, %s272_s19, %s273_s20  }
  0x12   :  { %267 = dma.done.wait [#allocation3], 256  }
  0x13   :  { %268 = vsyncadd [#allocation3], 4294967040  ;;  %v274_v0 = vmov 0   ;;  %v275_v1 = vmov 2   ;;  %v26_v2 = vld [vmem:[%s357_s0] sm:$0xff]  ;;  %v276_v3 = vmov 1   ;;  %v29_v5 = vlaneseq }
  0x14   :  { %210 = vset.pattern.permute.xlu0 %v274_v0  ;;  %212 = vset.pattern.permute.xlu1 %v275_v1  ;;  %v277_v4 = vmov 3   ;;  %v27_v8 = vld [vmem:[#allocation2] sm:$0xff]  ;;  %v278_v31 = vmov 6   ;;  %v279_v32 = vmov 4   ;;  %v280_v33 = vmov 9   ;;  %v28_v40 = vld [vmem:[#allocation2 + $0x8] sm:$0xff] }
  0x15   :  { %35 = vperm.xlu0 %210, %v26_v2   ;;  %55 = vperm.xlu1 %212, %v26_v2   ;;  %v315_v6 = vshrl.u32 %v29_v5, 7  ;;  %v281_v34 = vmov 5   ;;  %v282_v35 = vmov 7   ;;  %v283_v36 = vmov 8   ;;  %s284_s0 = smov [#allocation5]  }
  0x16   :  { %s187_s1 = sshll.u32 %s284_s0, 4  ;;  %s188_s1 = int_to_ptr.vmem [resolvable:$true] %s187_s1 }
  0x17   :  { %v40_v7 = vsub.s32 0, %v315_v6  ;;  %v31_v9 = vsub.s32 4, %v315_v6  ;;  %v50_v11 = vsub.s32 1, %v315_v6  ;;  %v60_v13 = vsub.s32 2, %v315_v6  ;;  %s245_s25 = scalar_lea.vmem %s188_s1, 128  ;;  %p250_p9 = scmp.lt.s32.totalorder %s188_s1, %s188_s1 }
  0x18   :  { %v70_v15 = vsub.s32 3, %v315_v6  ;;  %v86_v37 = vsub.s32 5, %v315_v6  ;;  %v96_v38 = vsub.s32 6, %v315_v6  ;;  %v77_v39 = vsub.s32 7, %v315_v6  ;;  %p246_p8 = scmp.ne.s32.totalorder %s188_s1, %s245_s25  ;;  %p251_p10 = scmp.lt.s32.totalorder %s245_s25, %s245_s25 }
  0x19   :  { %211 = vset.pattern.permute.xlu0 %v276_v3  ;;  %213 = vset.pattern.permute.xlu1 %v277_v4  ;;  %v41_v10 = vrot.slane %v27_v8, %v40_v7  ;;  %v32_v16 = vrot.slane %v27_v8, %v31_v9  ;;  %v51_v18 = vrot.slane %v27_v8, %v50_v11 }
  0x1a   :  { %45 = vperm.xlu0 %211, %v26_v2   ;;  %65 = vperm.xlu1 %213, %v26_v2   ;;  %v61_v19 = vrot.slane %v27_v8, %v60_v13  ;;  %v71_v20 = vrot.slane %v27_v8, %v70_v15  ;;  %v87_v41 = vrot.slane %v27_v8, %v86_v37  ;;  %p252_p11 = por %p251_p10, %p250_p9 }
  0x1b   :  { %v97_v42 = vrot.slane %v27_v8, %v96_v38  ;;  %v78_v43 = vrot.slane %v28_v40, %v77_v39  ;;  %v107_v47 = vrot.slane %v27_v8, %v77_v39  ;;  %v117_v52 = vrot.slane %v28_v40, %v40_v7 }
  0x1c   :  { %v127_v56 = vrot.slane %v28_v40, %v50_v11  ;;  %v137_v61 = vrot.slane %v28_v40, %v60_v13  ;;  %v147_v63 = vrot.slane %v28_v40, %v70_v15  ;;  %v167_v11 = vrot.slane %v28_v40, %v86_v37  ;;  %p253_p12 = pnand %p252_p11, %p246_p8 }
  0x1e   :  { %214 = vset.pattern.permute.xlu1 %v274_v0 }
  0x94   :  { %v36_v12 = vpop.permute.xlu0 %35  ;;  %v56_v14 = vpop.permute.xlu1 %55 }
  0x95   :  { %v42_v17 = vmul.f32 %v41_v10, %v36_v12  ;;  %v62_v25 = vmul.f32 %v61_v19, %v56_v14  ;;  %v177_v12 = vrot.slane %v28_v40, %v96_v38 }
  0x97   :  { %v43_v23 = vadd.f32 %v42_v17, %v32_v16 }
  0x99   :  { %v46_v21 = vpop.permute.xlu0 %45  ;;  %v66_v22 = vpop.permute.xlu1 %65 }
  0x9a   :  { %v52_v24 = vmul.f32 %v51_v18, %v46_v21  ;;  %v72_v27 = vmul.f32 %v71_v20, %v66_v22 }
  0x9c   :  { %v53_v26 = vadd.f32 %v52_v24, %v43_v23 }
  0x9e   :  { %v63_v28 = vadd.f32 %v62_v25, %v53_v26 }
  0xa0   :  { %v73_v29 = vadd.f32 %v72_v27, %v63_v28 }
  0xa2   :  { %v74_v30 = vmax.f32 %v73_v29, 0.0 }
  0xa4   :  { %91 = vperm.xlu0 %211, %v74_v30   ;;  %81 = vperm.xlu1 %214, %v74_v30  }
  0xa8   :  { %216 = vset.pattern.permute.xlu0 %v277_v4  ;;  %215 = vset.pattern.permute.xlu1 %v275_v1  ;;  %v157_v4 = vrot.slane %v28_v40, %v31_v9 }
  0xa9   :  { %111 = vperm.xlu0 %216, %v74_v30   ;;  %101 = vperm.xlu1 %215, %v74_v30  }
  0xad   :  { %219 = vset.pattern.permute.xlu0 %v278_v31  ;;  %217 = vset.pattern.permute.xlu1 %v279_v32 }
  0xae   :  { %141 = vperm.xlu0 %219, %v74_v30   ;;  %121 = vperm.xlu1 %217, %v74_v30  }
  0xb2   :  { %222 = vset.pattern.permute.xlu0 %v280_v33  ;;  %218 = vset.pattern.permute.xlu1 %v281_v34 }
  0xb3   :  { %171 = vperm.xlu0 %222, %v74_v30   ;;  %131 = vperm.xlu1 %218, %v74_v30  }
  0xb7   :  { %220 = vset.pattern.permute.xlu1 %v282_v35 }
  0xb8   :  { %151 = vperm.xlu1 %220, %v74_v30  }
  0xbc   :  { %221 = vset.pattern.permute.xlu1 %v283_v36 }
  0xbd   :  { %161 = vperm.xlu1 %221, %v74_v30  }
 0x123   :  { %v92_v44 = vpop.permute.xlu0 %91  ;;  %v82_v45 = vpop.permute.xlu1 %81 }
 0x124   :  { %v88_v46 = vmul.f32 %v87_v41, %v82_v45  ;;  %v98_v48 = vmul.f32 %v97_v42, %v92_v44 }
 0x126   :  { %v89_v49 = vadd.f32 %v88_v46, %v78_v43 }
 0x128   :  { %v99_v50 = vadd.f32 %v98_v48, %v89_v49  ;;  %v102_v51 = vpop.permute.xlu1 %101  ;;  %v112_v54 = vpop.permute.xlu0 %111 }
 0x129   :  { %v108_v53 = vmul.f32 %v107_v47, %v102_v51  ;;  %v118_v57 = vmul.f32 %v117_v52, %v112_v54 }
 0x12b   :  { %v109_v55 = vadd.f32 %v108_v53, %v99_v50 }
 0x12d   :  { %v122_v58 = vpop.permute.xlu1 %121  ;;  %v119_v59 = vadd.f32 %v118_v57, %v109_v55  ;;  %v142_v2 = vpop.permute.xlu0 %141 }
 0x12e   :  { %v128_v60 = vmul.f32 %v127_v56, %v122_v58  ;;  %v148_v5 = vmul.f32 %v147_v63, %v142_v2 }
 0x130   :  { %v129_v0 = vadd.f32 %v128_v60, %v119_v59 }
 0x132   :  { %v132_v62 = vpop.permute.xlu1 %131  ;;  %v172_v14 = vpop.permute.xlu0 %171 }
 0x133   :  { %v138_v1 = vmul.f32 %v137_v61, %v132_v62  ;;  %v178_v15 = vmul.f32 %v177_v12, %v172_v14 }
 0x135   :  { %v139_v3 = vadd.f32 %v138_v1, %v129_v0 }
 0x137   :  { %v152_v7 = vpop.permute.xlu1 %151  ;;  %v149_v8 = vadd.f32 %v148_v5, %v139_v3 }
 0x138   :  { %v158_v10 = vmul.f32 %v157_v4, %v152_v7 }
 0x13a   :  { %v159_v13 = vadd.f32 %v158_v10, %v149_v8 }
 0x13c   :  { %v162_v16 = vpop.permute.xlu1 %161 }
 0x13d   :  { %v168_v17 = vmul.f32 %v167_v11, %v162_v16 }
 0x13f   :  { %v169_v18 = vadd.f32 %v168_v17, %v159_v13 }
 0x141   :  { %v179_v19 = vadd.f32 %v178_v15, %v169_v18 }
 0x143   :  { %180 = vst [vmem:[#allocation5] sm:$0xff] %v179_v19 }
 0x144   :  { %256 = shalt.err (!%p253_p12)
}
 0x145   :  { %s257_s28 = scalar_lea.hbm %s359_s2, 128 }
 0x146   :  { %p258_p13 = scmp.ne.s32.totalorder %s359_s2, %s257_s28  ;;  %p261_p0 = scmp.lt.u32.totalorder %s257_s28, %s359_s2 }
 0x148   :  { %p263_p1 = pnand %p261_p0, %p258_p13 }
 0x14a   :  { %266 = shalt.err (!%p263_p1)
}
 0x14b   :  { %190 = dma.vmem_to_hbm [thread:$0]  %s188_s1, 128, %s359_s2, [#allocation4]  }
 0x14c   :  { %269 = dma.done.wait [#allocation4], 128  }
 0x14d   :  { %270 = vsyncadd [#allocation4], 4294967168 }
 0x14e   :  { %194 = vsyncpa [#allocation3], 1 }
 0x14f   :  { %195 = vsyncpa [#allocation4], 1 }

</bundles_post_ra>
